<compile_context>
chip_gen: v5e
topology: v5e:2x2
jax: 0.10.0
libtpu: 0.0.40
codegen_flags: <defaults>
</compile_context>

<pallas_src>
import jax
import jax.numpy as jnp
from jax.experimental import pallas as pl
from jax.experimental.pallas import tpu as pltpu


def _normalize_size(size):
    if isinstance(size, int):
        return (size, size, size, size)
    size = tuple(size)
    if len(size) == 2:
        return (size[0], size[0], size[1], size[1])
    assert len(size) == 4
    return size


def _pick_channel_block(nc, slab_bytes, target_bytes=2 << 20):
    """Largest divisor of `nc` whose input block stays under `target_bytes`."""
    best = 1
    for d in range(1, nc + 1):
        if nc % d == 0 and d * slab_bytes <= target_bytes:
            best = d
    # Prefer at least two grid steps so both v7x TensorCores get work.
    if best == nc and nc > 1 and nc % 2 == 0:
        best = nc // 2
    return best


def neg_pad2d(x, size):
    """Crop x (N, C, H, W) by (top, bottom, left, right) = normalized `size`."""
    top, bottom, left, right = _normalize_size(size)
    n, c, h, w = x.shape
    h_out = h - top - bottom
    w_out = w - left - right
    assert min(top, bottom, left, right) >= 0, "NegPad2d only supports cropping"
    assert h_out > 0 and w_out > 0, "crop larger than input"

    nc = n * c
    itemsize = jnp.dtype(x.dtype).itemsize
    slab_bytes = h * w * itemsize
    bc = _pick_channel_block(nc, slab_bytes)
    grid = (nc // bc,)

    # Collapse (N, C) into one big parallel axis (leading-dim reshape: free).
    x2 = x.reshape(nc, h, w)

    def kernel(x_ref, o_ref):
        # x_ref: (bc, H, W); o_ref: (bc, H_out, W_out). Static window copy.
        o_ref[...] = x_ref[:, top:top + h_out, left:left + w_out]

    in_block_bytes = bc * h * w * itemsize
    out_block_bytes = bc * h_out * w_out * itemsize
    vmem_needed = 2 * (in_block_bytes + out_block_bytes)  # double-buffered

    params = dict(dimension_semantics=("parallel",))
    if vmem_needed > (12 << 20):
        # Only raise the scoped-VMEM limit when a huge single slab forces it.
        params["vmem_limit_bytes"] = int(vmem_needed + (4 << 20))

    cost = pl.CostEstimate(
        flops=0,
        transcendentals=0,
        bytes_accessed=nc * h * w * itemsize + nc * h_out * w_out * itemsize,
    )

    out2 = pl.pallas_call(
        kernel,
        out_shape=jax.ShapeDtypeStruct((nc, h_out, w_out), x.dtype),
        grid=grid,
        in_specs=[pl.BlockSpec((bc, h, w), lambda i: (i, 0, 0))],
        out_specs=pl.BlockSpec((bc, h_out, w_out), lambda i: (i, 0, 0)),
        compiler_params=pltpu.CompilerParams(**params),
        cost_estimate=cost,
    )(x2)

    return out2.reshape(n, c, h_out, w_out)


if __name__ == "__main__":
    key = jax.random.PRNGKey(0)
    # Small NCHW input consistent with a 2D conv-style feature map.
    x = jax.random.normal(key, (2, 4, 16, 16), dtype=jnp.float32)

    size = (1, 2, 3, 1)  # (top, bottom, left, right)
    out = jax.block_until_ready(neg_pad2d(x, size))

    # Reference check against plain slicing semantics of the PyTorch module.
    top, bottom, left, right = size
    ref = x[:, :, top:x.shape[2] - bottom, left:x.shape[3] - right]
    assert out.shape == ref.shape, (out.shape, ref.shape)
    assert jnp.array_equal(out, ref), "mismatch vs reference crop"

    # int / len-2 constructor branches.
    out_int = jax.block_until_ready(neg_pad2d(x, 2))
    assert out_int.shape == (2, 4, 12, 12)
    assert jnp.array_equal(out_int, x[:, :, 2:14, 2:14])
    out_pair = jax.block_until_ready(neg_pad2d(x, (1, 3)))
    assert out_pair.shape == (2, 4, 14, 10)
    assert jnp.array_equal(out_pair, x[:, :, 1:15, 3:13])

    # Odd channel count + asymmetric crop + zero-crop identity path.
    y = jax.random.normal(jax.random.PRNGKey(1), (1, 3, 10, 12), dtype=jnp.float32)
    out_y = jax.block_until_ready(neg_pad2d(y, (1, 1, 2, 0)))
    assert jnp.array_equal(out_y, y[:, :, 1:9, 2:12])
    out_id = jax.block_until_ready(neg_pad2d(y, 0))
    assert jnp.array_equal(out_id, y)

    print("KERNEL_OK")
</pallas_src>

<mosaic_0001>
module attributes {stable_mosaic.version = 11 : i64} {
  func.func @kernel(%arg0: i32, %arg1: memref<4x16x16xf32, #tpu.memory_space<vmem>>, %arg2: memref<4x13x12xf32, #tpu.memory_space<vmem>>) attributes {dimension_semantics = [#tpu.dimension_semantics<parallel>], iteration_bounds = array<i64: 2>, scalar_prefetch = 0 : i64, scratch_operands = 0 : i64, tpu.core_type = #tpu.core_type<tc>, window_params = [{transform_indices = @transform_0, window_bounds = array<i64: 4, 16, 16>}, {transform_indices = @transform_1, window_bounds = array<i64: 4, 13, 12>}]} {
    %c0 = arith.constant 0 : index
    %c1 = arith.constant 1 : index
    %c3 = arith.constant 3 : index
    %0 = vector.load %arg1[%c0, %c1, %c3] : memref<4x16x16xf32, #tpu.memory_space<vmem>>, vector<4x13x12xf32>
    %c0_0 = arith.constant 0 : index
    %c0_1 = arith.constant 0 : index
    %c0_2 = arith.constant 0 : index
    %1 = vector.load %arg2[%c0_0, %c0_1, %c0_2] : memref<4x13x12xf32, #tpu.memory_space<vmem>>, vector<4x13x12xf32>
    tpu.vector_store %arg2[%c0_0, %c0_1, %c0_2], %0 {strides = array<i32>} : memref<4x13x12xf32, #tpu.memory_space<vmem>>, vector<4x13x12xf32>,
    return
  }
  func.func @transform_0(%arg0: i32) -> (i32, i32, i32) {
    %c0_i32 = arith.constant 0 : i32
    %c0_i32_0 = arith.constant 0 : i32
    %c0_i32_1 = arith.constant 0 : i32
    return %arg0, %c0_i32, %c0_i32_0 : i32, i32, i32
  }
  func.func @transform_1(%arg0: i32) -> (i32, i32, i32) {
    %c0_i32 = arith.constant 0 : i32
    %c0_i32_0 = arith.constant 0 : i32
    %c0_i32_1 = arith.constant 0 : i32
    return %arg0, %c0_i32, %c0_i32_0 : i32, i32, i32
  }
}

</mosaic_0001>

<bundles_post_ra>
// kernel: tpu_custom_call.1
= control target key start
LH: loop header
LB: loop body
LE: loop exit
PB: predicated region body
PF: predicated region fallthrough
CT: control target
= control target key end

     0   :  { %6 = vsyncpa [#allocation3], 0  ;;  %s497_s0 = inlined_call_operand.hbm [shape: f32[8,16,16], index: 0, kind: input, shape index: {}]   ;;  %s498_s1 = inlined_call_operand.vmem [shape: f32[8,13,12], index: 1, kind: output, shape index: {}]  }
   0x1   :  { %8 = vsyncpa [#allocation3 + $0x1], 0  ;;  %s402_s6 = smov 0   ;;  %s404_s7 = smov 0  }
   0x2   :  { %s406_s8 = smov 0   ;;  %s408_s9 = smov 0  }
   0x3 LB: > { %s263_s10 = sadd.s32 4294967295, %s387_s9   ;;  %s422_s11 = sadd.s32 1, %s387_s9   ;;  %s387_s9 = sphi %s408_s9, %s505_s9   ;;  %s383_s8 = sphi %s406_s8, %s504_s8   ;;  %s379_s7 = sphi %s404_s7, %s503_s7   ;;  %s375_s6 = sphi %s402_s6, %s502_s6  }
   0x4   : > { %s18_s12 = ssub.s32 %s387_s9, %s422_s11  ;;  %s21_s13 = sadd.s32 1, %s383_s8 }
   0x5   : > { %p19_p0 = scmp.eq.s32.totalorder %s18_s12, 0  ;;  %p28_p1 = scmp.ne.s32.totalorder %s383_s8, %s379_s7 }
   0x6   : > { %p29_p2 = scmp.eq.s32.totalorder %s387_s9, 0  ;;  %p34_p3 = scmp.ne.s32.totalorder %s379_s7, %s375_s6 }
   0x7   : > { %s432_s14 = scalar_select %p19_p0, %s383_s8, %s21_s13  }
   0x8   : > { %p434_p4 = por %p29_p2, %p28_p1  ;;  %p35_p5 = scmp.eq.s32.totalorder %s263_s10, 0 }
   0x9   : > { %p287_p6 = scmp.lt.s32.totalorder %s387_s9, 2  ;;  %s84_s17 = sand.u32 1, %s383_s8  }
   0xa   : > { %p441_p7 = por %p35_p5, %p34_p3  ;;  %s267_s18 = sshll.u32 %s84_s17, 6 }
   0xb   : > { %s279_s19 = sshll.u32 %s387_s9, 6  ;;  %s88_s23 = scalar_lea.vmem [#allocation2], %s267_s18 }
   0xc   : > { %s94_s22 = scalar_lea.hbm %s497_s0, %s279_s19  ;;  %s97_s24 = sshll.u32 %s88_s23, 4  ;;  %s98_s24 = int_to_ptr.vmem [resolvable:$true] %s97_s24 }
   0xd   : > { %s95_s25 = sshll.u32 %s94_s22, 4  ;;  %p452_p8 = pnand %p287_p6, %p434_p4  ;;  %s96_s25 = int_to_ptr.hbm [resolvable:$true] %s95_s25 }
   0xe   : > { %p271_p9 = scmp.ge.s32.totalorder %s387_s9, 1  ;;  %s85_s27 = scalar_lea.sflag [#allocation3], %s84_s17 }
   0xf   : > { %s323_s28 = sshra.s32 %s96_s25, 4  ;;  %p327_p11 = pneg %p452_p8  ;;  %s324_s28 = int_to_ptr.hbm [resolvable:$true] %s323_s28 }
  0x10   : > { %s325_s29 = scalar_lea.hbm %s324_s28, 64  ;;  %s330_s3 = scalar_lea.hbm %s497_s0, 128 }
  0x11   : > { %p326_p10 = scmp.ne.s32.totalorder %s324_s28, %s325_s29  ;;  %p331_p0 = scmp.lt.s32.totalorder %s324_s28, %s497_s0 }
  0x12   : > { %p332_p1 = scmp.lt.s32.totalorder %s330_s3, %s325_s29 }
  0x13   : > { %p328_p12 = pnand %p327_p11, %p326_p10 }
  0x14   : > { %p333_p2 = por %p332_p1, %p331_p0 }
  0x15   : > { %p329_p13 = pneg %p328_p12 }
  0x17   : > { %p334_p3 = pnand %p333_p2, %p329_p13 }
  0x19   : > { %337 = shalt.err (!%p334_p3)
}
  0x1a   : > { %s389_s6 = smov 128   ;;  %s390_s12 = smov 8  }
  0x1b   : > { %286 = dma.hbm_to_vmem [thread:$0]  (!%p452_p8), %s96_s25, 1024, %s98_s24, %s85_s27, %s389_s6, %s389_s6, %s390_s12  }
  0x1c   : > { %p105_p4 = scmp.lt.s32.totalorder %s387_s9, 3 }
  0x1e   : > { %p106_p5 = pnand %p271_p9, %p105_p4 }
  0x1f   : > { %s111_s13 = sand.u32 (!%p106_p5), 1, %s379_s7  }
  0x20   : > { %109 = sbr.rel (%p106_p5) target bundleno = 172 (0xac), region = 24  ;;  %s272_s15 = sshll.u32 (!%p106_p5), %s111_s13, 6 }
  0x21   : > { %s112_s17 = scalar_lea.sflag (!%p106_p5), [#allocation3], %s111_s13  ;;  %s115_s18 = scalar_lea.vmem (!%p106_p5), [#allocation2], %s272_s15 }
  0x25   : > { %370 = dma.done.wait (%p441_p7), %s112_s17, 1024  }
  0x26   : > { %372 = vsyncadd (%p441_p7), %s112_s17, 4294966272  ;;  %v146_v0 = vld [vmem:[%s115_s18 + $0x11] sm:$0xff]  ;;  %v144_v1 = vld [vmem:[%s115_s18 + $0x1] sm:$0xff]  ;;  %s391_s19 = smov 125   ;;  %s273_s16 = sshll.u32 %s263_s10, 2  ;;  %vm184_vm0 = vcmask 97280  }
  0x27   : > { %164 = vrot.lane.b32.xlu1 %v146_v0, %s391_s19  ;;  %160 = vrot.lane.b32.xlu0 %v144_v1, %s391_s19  ;;  %v148_v2 = vld [vmem:[%s115_s18 + $0x21] sm:$0xff]  ;;  %v147_v3 = vld [vmem:[%s115_s18 + $0x19] sm:$0x1f]  ;;  %p138_p6 = scmp.lt.s32.totalorder %s273_s16, 7  ;;  %vm186_vm1 = vcmask 94208  }
  0x28   : > { %168 = vrot.lane.b32.xlu2 %v148_v2, %s391_s19  ;;  %v145_v4 = vld [vmem:[%s115_s18 + $0x9] sm:$0x1f]  ;;  %v151_v6 = vld [vmem:[%s115_s18 + $0x39] sm:$0x1f]  ;;  %v150_v7 = vld [vmem:[%s115_s18 + $0x31] sm:$0xff] }
  0x29   : > { %v149_v5 = vld [vmem:[%s115_s18 + $0x29] sm:$0x1f]  ;;  %s507_s16 = smov (!%p138_p6, %s273_s16), 7 }
  0x2a   : > { %s280_s20 = sshll.u32 %s507_s16, 4 }
  0x2b   : > { %s142_s23 = scalar_lea.vmem %s498_s1, %s280_s20 }
  0x2f   : > { %166 = vrot.lane.b32.xlu1 %v147_v3, %s391_s19  ;;  %162 = vrot.lane.b32.xlu0 %v145_v4, %s391_s19 }
  0x30   : > { %170 = vrot.lane.b32.xlu2 %v149_v5, %s391_s19 }
  0x37   : > { %174 = vrot.lane.b32.xlu1 %v151_v6, %s391_s19  ;;  %172 = vrot.lane.b32.xlu0 %v150_v7, %s391_s19 }
  0x82   : > { %v169_v8 = vpop.permute.xlu2 %168 }
  0x83   : > { %190 = vst.msk [vmem:[%s142_s23 + $0x20] sm:$0xff] %vm184_vm0, %v169_v8 }
  0x8a   : > { %v171_v11 = vpop.permute.xlu2 %170 }
  0x8b   : > { %191 = vst.msk [vmem:[%s142_s23 + $0x28] sm:$0x1f] %vm186_vm1, %v171_v11 }
  0x99   : > { %v165_v9 = vpop.permute.xlu1 %164  ;;  %v161_v10 = vpop.permute.xlu0 %160 }
  0x9a   : > { %185 = vst.msk [vmem:[%s142_s23] sm:$0xff] %vm184_vm0, %v161_v10 }
  0x9b   : > { %188 = vst.msk [vmem:[%s142_s23 + $0x10] sm:$0xff] %vm184_vm0, %v165_v9 }
  0xa1   : > { %v167_v12 = vpop.permute.xlu1 %166  ;;  %v163_v13 = vpop.permute.xlu0 %162 }
  0xa2   : > { %187 = vst.msk [vmem:[%s142_s23 + $0x8] sm:$0x1f] %vm186_vm1, %v163_v13 }
  0xa3   : > { %189 = vst.msk [vmem:[%s142_s23 + $0x18] sm:$0x1f] %vm186_vm1, %v167_v12 }
  0xa9   : > { %v175_v14 = vpop.permute.xlu1 %174  ;;  %v173_v15 = vpop.permute.xlu0 %172 }
  0xaa   : > { %193 = vst.msk [vmem:[%s142_s23 + $0x38] sm:$0x1f] %vm186_vm1, %v175_v14 }
  0xab   : > { %192 = vst.msk [vmem:[%s142_s23 + $0x30] sm:$0xff] %vm184_vm0, %v173_v15 }
  0xac PF: > { %p11_p7 = scmp.ge.s32.totalorder %s422_s11, 4   ;;  %s502_s6 = smov %s379_s7 }
  0xad   : > { %s503_s7 = smov %s383_s8  ;;  %s504_s8 = smov %s432_s14 }
  0xae   : > { %s505_s9 = smov %s422_s11  ;;  %13 = sbr.rel (!%p11_p7) target bundleno = 3 (0x3), region = 64 }
  0xb3   :  { %218 = vsyncpa [#allocation3], 1 }
  0xb4   :  { %220 = vsyncpa [#allocation3 + $0x1], 1 }

</bundles_post_ra>
